<compile_context>
chip_gen: v5e
topology: v5e:2x2
jax: 0.10.0
libtpu: 0.0.40
codegen_flags: <defaults>
</compile_context>

<pallas_src>
import functools
import math

import numpy as np
import jax
import jax.numpy as jnp
from jax.experimental import pallas as pl
from jax.experimental.pallas import tpu as pltpu

PAD_ID = 1                       # RoBERTa padding token id (code_inputs.ne(1))
_VMEM_LIMIT = 48 * 1024 * 1024   # explicit scoped-VMEM budget (v7x-safe)


# ------------------------------- tiling utils ------------------------------

def _pick_tile(dim, target, align):
    """Largest multiple of `align` <= target that divides dim, else full dim."""
    if dim <= target:
        return dim
    t = (target // align) * align
    while t >= align:
        if dim % t == 0:
            return t
        t -= align
    return dim


def _gelu(y):
    # TODO(synk): HF RoBERTa uses exact (erf) GELU; tanh approximation used
    # here for robust Mosaic lowering.
    return 0.5 * y * (1.0 + jnp.tanh(0.7978845608028654 *
                                     (y + 0.044715 * y * y * y)))


def _ln(x, g, b, eps):
    mean = jnp.mean(x, axis=-1, keepdims=True)
    xc = x - mean
    var = jnp.mean(xc * xc, axis=-1, keepdims=True)
    return xc * jax.lax.rsqrt(var + eps) * g + b


# ------------------------------ dense (GEMM) -------------------------------

def _dense_fullk_kernel(x_ref, w_ref, b_ref, o_ref, *, activation):
    y = jnp.dot(x_ref[...], w_ref[...], preferred_element_type=jnp.float32)
    y = y + b_ref[...]
    if activation == "gelu":
        y = _gelu(y)
    o_ref[...] = y.astype(o_ref.dtype)


def _dense_ktiled_kernel(x_ref, w_ref, b_ref, o_ref, acc_ref, *, activation):
    @pl.when(pl.program_id(2) == 0)
    def _():
        acc_ref[...] = jnp.zeros_like(acc_ref)

    acc_ref[...] += jnp.dot(x_ref[...], w_ref[...],
                            preferred_element_type=jnp.float32)

    @pl.when(pl.program_id(2) == pl.num_programs(2) - 1)
    def _():
        y = acc_ref[...] + b_ref[...]
        if activation == "gelu":
            y = _gelu(y)
        o_ref[...] = y.astype(o_ref.dtype)


def dense(x, w, b, activation="none", *, tm=1024, tn=768, tk=1536,
          out_dtype=jnp.bfloat16):
    M, K = x.shape
    N = w.shape[1]
    tm = _pick_tile(M, tm, 8)
    tn = _pick_tile(N, tn, 128)
    bias = b.reshape(1, N).astype(jnp.float32)
    out_isize = np.dtype(out_dtype).itemsize
    cost = pl.CostEstimate(
        flops=2 * M * N * K,
        transcendentals=(M * N if activation == "gelu" else 0),
        bytes_accessed=(M * K * x.dtype.itemsize + K * N * w.dtype.itemsize
                        + N * 4 + M * N * out_isize))
    if K <= tk:
        # Single K step: no accumulator scratch / round-trip.
        return pl.pallas_call(
            functools.partial(_dense_fullk_kernel, activation=activation),
            grid=(M // tm, N // tn),
            in_specs=[pl.BlockSpec((tm, K), lambda i, j: (i, 0)),
                      pl.BlockSpec((K, tn), lambda i, j: (0, j)),
                      pl.BlockSpec((1, tn), lambda i, j: (0, j))],
            out_specs=pl.BlockSpec((tm, tn), lambda i, j: (i, j)),
            out_shape=jax.ShapeDtypeStruct((M, N), out_dtype),
            compiler_params=pltpu.CompilerParams(
                dimension_semantics=("parallel", "parallel"),
                vmem_limit_bytes=_VMEM_LIMIT),
            cost_estimate=cost,
        )(x, w, bias)

    tk = _pick_tile(K, tk, 128)
    return pl.pallas_call(
        functools.partial(_dense_ktiled_kernel, activation=activation),
        grid=(M // tm, N // tn, K // tk),
        in_specs=[pl.BlockSpec((tm, tk), lambda i, j, k: (i, k)),
                  pl.BlockSpec((tk, tn), lambda i, j, k: (k, j)),
                  pl.BlockSpec((1, tn), lambda i, j, k: (0, j))],
        out_specs=pl.BlockSpec((tm, tn), lambda i, j, k: (i, j)),
        out_shape=jax.ShapeDtypeStruct((M, N), out_dtype),
        scratch_shapes=[pltpu.VMEM((tm, tn), jnp.float32)],
        compiler_params=pltpu.CompilerParams(
            dimension_semantics=("parallel", "parallel", "arbitrary"),
            vmem_limit_bytes=_VMEM_LIMIT),
        cost_estimate=cost,
    )(x, w, bias)


# --------------------- dense + residual-add + LayerNorm ---------------------

def _dense_add_ln_fullk_kernel(x_ref, w_ref, b_ref, r_ref, g_ref, bb_ref,
                               o_ref, *, eps):
    y = jnp.dot(x_ref[...], w_ref[...], preferred_element_type=jnp.float32)
    y = y + b_ref[...] + r_ref[...].astype(jnp.float32)
    o_ref[...] = _ln(y, g_ref[...], bb_ref[...], eps).astype(o_ref.dtype)


def _dense_add_ln_ktiled_kernel(x_ref, w_ref, b_ref, r_ref, g_ref, bb_ref,
                                o_ref, acc_ref, *, eps):
    @pl.when(pl.program_id(1) == 0)
    def _():
        acc_ref[...] = jnp.zeros_like(acc_ref)

    acc_ref[...] += jnp.dot(x_ref[...], w_ref[...],
                            preferred_element_type=jnp.float32)

    @pl.when(pl.program_id(1) == pl.num_programs(1) - 1)
    def _():
        y = acc_ref[...] + b_ref[...] + r_ref[...].astype(jnp.float32)
        o_ref[...] = _ln(y, g_ref[...], bb_ref[...], eps).astype(o_ref.dtype)


def dense_add_ln(x, w, b, res, gamma, beta, eps=1e-5, *, tm=1024, tk=1536,
                 out_dtype=jnp.bfloat16):
    """GEMM with fused (+bias, +residual, LayerNorm) epilogue; tn == N."""
    M, K = x.shape
    N = w.shape[1]
    tm = _pick_tile(M, tm, 8)
    bias = b.reshape(1, N).astype(jnp.float32)
    g = gamma.reshape(1, N).astype(jnp.float32)
    bb = beta.reshape(1, N).astype(jnp.float32)
    out_isize = np.dtype(out_dtype).itemsize
    cost = pl.CostEstimate(
        flops=2 * M * N * K + 8 * M * N,
        transcendentals=0,
        bytes_accessed=(M * K * x.dtype.itemsize + K * N * w.dtype.itemsize
                        + M * N * res.dtype.itemsize + M * N * out_isize))
    if K <= tk:
        return pl.pallas_call(
            functools.partial(_dense_add_ln_fullk_kernel, eps=eps),
            grid=(M // tm,),
            in_specs=[pl.BlockSpec((tm, K), lambda i: (i, 0)),
                      pl.BlockSpec((K, N), lambda i: (0, 0)),
                      pl.BlockSpec((1, N), lambda i: (0, 0)),
                      pl.BlockSpec((tm, N), lambda i: (i, 0)),
                      pl.BlockSpec((1, N), lambda i: (0, 0)),
                      pl.BlockSpec((1, N), lambda i: (0, 0))],
            out_specs=pl.BlockSpec((tm, N), lambda i: (i, 0)),
            out_shape=jax.ShapeDtypeStruct((M, N), out_dtype),
            compiler_params=pltpu.CompilerParams(
                dimension_semantics=("parallel",),
                vmem_limit_bytes=_VMEM_LIMIT),
            cost_estimate=cost,
        )(x, w, bias, res, g, bb)

    tk = _pick_tile(K, tk, 128)
    return pl.pallas_call(
        functools.partial(_dense_add_ln_ktiled_kernel, eps=eps),
        grid=(M // tm, K // tk),
        in_specs=[pl.BlockSpec((tm, tk), lambda i, k: (i, k)),
                  pl.BlockSpec((tk, N), lambda i, k: (k, 0)),
                  pl.BlockSpec((1, N), lambda i, k: (0, 0)),
                  pl.BlockSpec((tm, N), lambda i, k: (i, 0)),
                  pl.BlockSpec((1, N), lambda i, k: (0, 0)),
                  pl.BlockSpec((1, N), lambda i, k: (0, 0))],
        out_specs=pl.BlockSpec((tm, N), lambda i, k: (i, 0)),
        out_shape=jax.ShapeDtypeStruct((M, N), out_dtype),
        scratch_shapes=[pltpu.VMEM((tm, N), jnp.float32)],
        compiler_params=pltpu.CompilerParams(
            dimension_semantics=("parallel", "arbitrary"),
            vmem_limit_bytes=_VMEM_LIMIT),
        cost_estimate=cost,
    )(x, w, bias, res, g, bb)


# -------------------------------- LayerNorm --------------------------------

def _layernorm_kernel(x_ref, g_ref, b_ref, o_ref, *, eps):
    o_ref[...] = _ln(x_ref[...].astype(jnp.float32), g_ref[...], b_ref[...],
                     eps).astype(o_ref.dtype)


def layernorm(x, gamma, beta, eps=1e-5, *, tm=1024, out_dtype=jnp.bfloat16):
    M, H = x.shape
    tm = _pick_tile(M, tm, 8)
    row_spec = pl.BlockSpec((tm, H), lambda i: (i, 0))
    vec_spec = pl.BlockSpec((1, H), lambda i: (0, 0))
    return pl.pallas_call(
        functools.partial(_layernorm_kernel, eps=eps),
        grid=(M // tm,),
        in_specs=[row_spec, vec_spec, vec_spec],
        out_specs=row_spec,
        out_shape=jax.ShapeDtypeStruct((M, H), out_dtype),
        compiler_params=pltpu.CompilerParams(
            dimension_semantics=("parallel",),
            vmem_limit_bytes=_VMEM_LIMIT),
    )(x, gamma.reshape(1, H).astype(jnp.float32),
      beta.reshape(1, H).astype(jnp.float32))


# -------------------------------- attention ---------------------------------

def _attention_kernel(q_ref, k_ref, v_ref, bias_ref, o_ref, *, scale,
                      num_heads):
    # q block [1, tq, H]; k/v blocks [1, S, H] are lane windows into the fused
    # [B, S, 3H] qkv tensor (no JAX-side slicing / HBM copies).
    # TODO(synk): for very long sequences switch to a flash-style
    # online-softmax KV loop; here K/V stay whole-sequence per batch element.
    H = q_ref.shape[2]
    Dh = H // num_heads
    q = (q_ref[0] * scale).astype(jnp.bfloat16)      # fold scale into q once
    k = k_ref[0].astype(jnp.bfloat16)
    v = v_ref[0].astype(jnp.bfloat16)
    bias = bias_ref[0].astype(jnp.float32)           # [1, S] additive mask
    pair_store = (num_heads % 2 == 0)
    ctx_prev = None
    for h in range(num_heads):
        lo = h * Dh
        qh = q[:, lo:lo + Dh]
        kh = k[:, lo:lo + Dh]
        vh = v[:, lo:lo + Dh]
        s = jax.lax.dot_general(qh, kh, (((1,), (1,)), ((), ())),
                                preferred_element_type=jnp.float32) + bias
        m = jnp.max(s, axis=-1, keepdims=True)
        e = jnp.exp(s - m)
        denom = jnp.sum(e, axis=-1, keepdims=True)
        ctx = jax.lax.dot_general(e.astype(jnp.bfloat16), vh,
                                  (((1,), (0,)), ((), ())),
                                  preferred_element_type=jnp.float32)
        ctx = ctx * pl.reciprocal(denom, approx=True)    # normalize after PV
        if pair_store:
            if h % 2 == 0:
                ctx_prev = ctx
            else:  # write two heads as one aligned 2*Dh-wide lane slice
                o_ref[0, :, lo - Dh:lo + Dh] = jnp.concatenate(
                    [ctx_prev, ctx], axis=-1).astype(o_ref.dtype)
        else:
            o_ref[0, :, lo:lo + Dh] = ctx.astype(o_ref.dtype)


def attention(qkv, bias, scale, num_heads, *, tq=256):
    B, S, H3 = qkv.shape
    H = H3 // 3
    tq = _pick_tile(S, tq, 8)
    cost = pl.CostEstimate(
        flops=4 * B * S * S * H,
        transcendentals=B * num_heads * S * S,
        bytes_accessed=(4 * B * S * H) * qkv.dtype.itemsize + B * S * 4)
    return pl.pallas_call(
        functools.partial(_attention_kernel, scale=scale,
                          num_heads=num_heads),
        grid=(B, S // tq),
        in_specs=[pl.BlockSpec((1, tq, H), lambda b, qi: (b, qi, 0)),
                  pl.BlockSpec((1, S, H), lambda b, qi: (b, 0, 1)),
                  pl.BlockSpec((1, S, H), lambda b, qi: (b, 0, 2)),
                  pl.BlockSpec((1, 1, S), lambda b, qi: (b, 0, 0))],
        out_specs=pl.BlockSpec((1, tq, H), lambda b, qi: (b, qi, 0)),
        out_shape=jax.ShapeDtypeStruct((B, S, H), qkv.dtype),
        compiler_params=pltpu.CompilerParams(
            dimension_semantics=("parallel", "parallel"),
            vmem_limit_bytes=_VMEM_LIMIT),
        cost_estimate=cost,
    )(qkv, qkv, qkv, bias)


# --------------------------- masked mean-pool + L2 --------------------------

def _pool_normalize_kernel(h_ref, m_ref, o_ref):
    m = m_ref[...]                                             # [tb, S] f32
    counts = jnp.maximum(jnp.sum(m, axis=-1, keepdims=True), 1.0)
    tb = h_ref.shape[0]
    for b in range(tb):              # tb <= 8: short static loop, all 2-D ops
        hb = h_ref[b].astype(jnp.bfloat16)                     # [S, H]
        mb = m[b:b + 1, :].astype(jnp.bfloat16)                # [1, S]
        summed = jnp.dot(mb, hb, preferred_element_type=jnp.float32)  # [1, H]
        pooled = summed / counts[b:b + 1, :]                   # exact divide
        sq = jnp.sum(pooled * pooled, axis=-1, keepdims=True)
        inv = jax.lax.rsqrt(jnp.maximum(sq, 1e-24))   # F.normalize eps=1e-12
        o_ref[b:b + 1, :] = (pooled * inv).astype(o_ref.dtype)


def pool_normalize(hidden, mask, *, tb=8):
    B, S, H = hidden.shape
    tb = _pick_tile(B, tb, 8)     # multiple of 8 or full B (sublane rule)
    return pl.pallas_call(
        _pool_normalize_kernel,
        grid=(B // tb,),
        in_specs=[pl.BlockSpec((tb, S, H), lambda i: (i, 0, 0)),
                  pl.BlockSpec((tb, S), lambda i: (i, 0))],
        out_specs=pl.BlockSpec((tb, H), lambda i: (i, 0)),
        out_shape=jax.ShapeDtypeStruct((B, H), jnp.float32),
        compiler_params=pltpu.CompilerParams(
            dimension_semantics=("parallel",),
            vmem_limit_bytes=_VMEM_LIMIT),
    )(hidden, mask)


# --------------------------- parameter creation ----------------------------

def init_params(key, *, vocab, max_pos, type_vocab, H, I, L):
    def nrm(k, shape, scale=0.02, dtype=jnp.float32):
        return (scale * jax.random.normal(k, shape, dtype=jnp.float32)
                ).astype(dtype)

    keys = jax.random.split(key, 3 + L)
    params = {
        "word_emb": nrm(keys[0], (vocab, H)),
        "pos_emb": nrm(keys[1], (max_pos, H)),
        "type_emb": nrm(keys[2], (type_vocab, H)),
        "emb_ln_g": jnp.ones((H,), jnp.float32),
        "emb_ln_b": jnp.zeros((H,), jnp.float32),
        "layers": [],
    }
    for l in range(L):
        ks = jax.random.split(keys[3 + l], 6)
        wq, wk, wv = (nrm(ks[i], (H, H)) for i in range(3))
        params["layers"].append({
            # QKV pre-packed once at parameter-prep time (bf16 weights).
            "wqkv": jnp.concatenate([wq, wk, wv], axis=1).astype(jnp.bfloat16),
            "bqkv": jnp.zeros((3 * H,), jnp.float32),
            "wo": nrm(ks[3], (H, H), dtype=jnp.bfloat16),
            "bo": jnp.zeros((H,), jnp.float32),
            "ln1_g": jnp.ones((H,), jnp.float32),
            "ln1_b": jnp.zeros((H,), jnp.float32),
            "wi": nrm(ks[4], (H, I), dtype=jnp.bfloat16),
            "bi": jnp.zeros((I,), jnp.float32),
            "wf": nrm(ks[5], (I, H), dtype=jnp.bfloat16),
            "bf": jnp.zeros((H,), jnp.float32),
            "ln2_g": jnp.ones((H,), jnp.float32),
            "ln2_b": jnp.zeros((H,), jnp.float32),
        })
    return params


# ------------------------------ forward pass -------------------------------

def unixcoder_forward(params, code_inputs, num_heads):
    """Mirrors UniXEncoderBase.forward: RoBERTa encoder (eval mode, dropout
    off) -> masked mean-pool over non-pad tokens -> L2 normalize."""
    B, S = code_inputs.shape
    H = params["word_emb"].shape[1]
    Dh = H // num_heads

    mask = (code_inputs != PAD_ID)                       # code_inputs.ne(1)
    mask_f = mask.astype(jnp.float32)

    # RoBERTa position ids: cumsum over non-pad positions, offset by pad idx.
    pos_ids = (jnp.cumsum(mask.astype(jnp.int32), axis=1)
               * mask.astype(jnp.int32) + PAD_ID)

    emb = (jnp.take(params["word_emb"], code_inputs, axis=0)
           + jnp.take(params["pos_emb"], pos_ids, axis=0)
           + params["type_emb"][0][None, None, :])
    x = layernorm(emb.reshape(B * S, H),
                  params["emb_ln_g"], params["emb_ln_b"])        # bf16 stream

    attn_bias = ((1.0 - mask_f) * -1e9).reshape(B, 1, S)
    scale = 1.0 / math.sqrt(Dh)

    for layer in params["layers"]:
        # Fused QKV projection (pre-packed [H, 3H] weight), bf16 output.
        qkv = dense(x, layer["wqkv"], layer["bqkv"]).reshape(B, S, 3 * H)
        ctx = attention(qkv, attn_bias, scale, num_heads)        # [B, S, H]
        # attention-output GEMM with fused residual-add + LayerNorm epilogue.
        x = dense_add_ln(ctx.reshape(B * S, H), layer["wo"], layer["bo"],
                         x, layer["ln1_g"], layer["ln1_b"])
        inter = dense(x, layer["wi"], layer["bi"], activation="gelu")
        # FFN-down GEMM with fused residual-add + LayerNorm epilogue.
        x = dense_add_ln(inter, layer["wf"], layer["bf"],
                         x, layer["ln2_g"], layer["ln2_b"])

    hidden = x.reshape(B, S, H)                          # outputs[0]
    return pool_normalize(hidden, mask_f)


# ----------------------------------- main -----------------------------------

if __name__ == "__main__":
    B, S = 2, 8
    H, NUM_HEADS, INTER, LAYERS = 128, 4, 256, 2
    VOCAB, MAX_POS, TYPE_VOCAB = 64, 32, 1

    root = jax.random.PRNGKey(0)
    k_params, k_ids = jax.random.split(root)

    params = init_params(k_params, vocab=VOCAB, max_pos=MAX_POS,
                         type_vocab=TYPE_VOCAB, H=H, I=INTER, L=LAYERS)

    # Deterministic token ids with trailing pad tokens (id == 1).
    code_inputs = jax.random.randint(k_ids, (B, S), 2, VOCAB, dtype=jnp.int32)
    code_inputs = code_inputs.at[0, 6:].set(PAD_ID)
    code_inputs = code_inputs.at[1, 5:].set(PAD_ID)

    out = unixcoder_forward(params, code_inputs, NUM_HEADS)
    out = jax.block_until_ready(out)

    assert out.shape == (B, H)
    # embeddings are L2-normalized rows
    norms = jnp.linalg.norm(out, axis=1)
    assert bool(jnp.all(jnp.abs(norms - 1.0) < 1e-3))
    print("KERNEL_OK")
</pallas_src>

<mosaic_0001>
module attributes {stable_mosaic.version = 11 : i64} {
  func.func @_layernorm_kernel(%arg0: i32, %arg1: memref<16x128xf32, #tpu.memory_space<vmem>>, %arg2: memref<1x128xf32, #tpu.memory_space<vmem>>, %arg3: memref<1x128xf32, #tpu.memory_space<vmem>>, %arg4: memref<16x128xbf16, #tpu.memory_space<vmem>>) attributes {dimension_semantics = [#tpu.dimension_semantics<parallel>], iteration_bounds = array<i64: 1>, scalar_prefetch = 0 : i64, scratch_operands = 0 : i64, tpu.core_type = #tpu.core_type<tc>, window_params = [{transform_indices = @transform_0, window_bounds = array<i64: 16, 128>}, {pipeline_mode = #tpu.pipeline_mode<synchronous>, transform_indices = @transform_1, window_bounds = array<i64: 1, 128>}, {pipeline_mode = #tpu.pipeline_mode<synchronous>, transform_indices = @transform_2, window_bounds = array<i64: 1, 128>}, {transform_indices = @transform_3, window_bounds = array<i64: 16, 128>}]} {
    %c0 = arith.constant 0 : index
    %c0_0 = arith.constant 0 : index
    %0 = vector.load %arg1[%c0, %c0_0] : memref<16x128xf32, #tpu.memory_space<vmem>>, vector<16x128xf32>
    %c0_1 = arith.constant 0 : index
    %c0_2 = arith.constant 0 : index
    %1 = vector.load %arg2[%c0_1, %c0_2] : memref<1x128xf32, #tpu.memory_space<vmem>>, vector<1x128xf32>
    %c0_3 = arith.constant 0 : index
    %c0_4 = arith.constant 0 : index
    %2 = vector.load %arg3[%c0_3, %c0_4] : memref<1x128xf32, #tpu.memory_space<vmem>>, vector<1x128xf32>
    %cst = arith.constant dense<0.000000e+00> : vector<16xf32>
    %3 = vector.multi_reduction <add>, %0, %cst [1] : vector<16x128xf32> to vector<16xf32>
    %4 = vector.shape_cast %3 : vector<16xf32> to vector<16x1xf32>
    %cst_5 = arith.constant 1.280000e+02 : f32
    %5 = vector.broadcast %cst_5 : f32 to vector<16x1xf32>
    %6 = arith.divf %4, %5 : vector<16x1xf32>
    %7 = vector.broadcast %6 : vector<16x1xf32> to vector<16x128xf32>
    %8 = arith.subf %0, %7 : vector<16x128xf32>
    %9 = arith.mulf %8, %8 : vector<16x128xf32>
    %cst_6 = arith.constant dense<0.000000e+00> : vector<16xf32>
    %10 = vector.multi_reduction <add>, %9, %cst_6 [1] : vector<16x128xf32> to vector<16xf32>
    %11 = vector.shape_cast %10 : vector<16xf32> to vector<16x1xf32>
    %cst_7 = arith.constant 1.280000e+02 : f32
    %12 = vector.broadcast %cst_7 : f32 to vector<16x1xf32>
    %13 = arith.divf %11, %12 : vector<16x1xf32>
    %cst_8 = arith.constant 9.99999974E-6 : f32
    %14 = vector.broadcast %cst_8 : f32 to vector<16x1xf32>
    %15 = arith.addf %13, %14 : vector<16x1xf32>
    %16 = math.rsqrt %15 : vector<16x1xf32>
    %17 = vector.broadcast %16 : vector<16x1xf32> to vector<16x128xf32>
    %18 = arith.mulf %8, %17 : vector<16x128xf32>
    %19 = vector.broadcast %1 : vector<1x128xf32> to vector<16x128xf32>
    %20 = arith.mulf %18, %19 : vector<16x128xf32>
    %21 = vector.broadcast %2 : vector<1x128xf32> to vector<16x128xf32>
    %22 = arith.addf %20, %21 : vector<16x128xf32>
    %23 = arith.truncf %22 : vector<16x128xf32> to vector<16x128xbf16>
    %c0_9 = arith.constant 0 : index
    %c0_10 = arith.constant 0 : index
    %24 = vector.load %arg4[%c0_9, %c0_10] : memref<16x128xbf16, #tpu.memory_space<vmem>>, vector<16x128xbf16>
    tpu.vector_store %arg4[%c0_9, %c0_10], %23 {strides = array<i32>} : memref<16x128xbf16, #tpu.memory_space<vmem>>, vector<16x128xbf16>,
    return
  }
  func.func @transform_0(%arg0: i32) -> (i32, i32) {
    %c0_i32 = arith.constant 0 : i32
    %c0_i32_0 = arith.constant 0 : i32
    return %arg0, %c0_i32 : i32, i32
  }
  func.func @transform_1(%arg0: i32) -> (i32, i32) {
    %c0_i32 = arith.constant 0 : i32
    %c0_i32_0 = arith.constant 0 : i32
    %c0_i32_1 = arith.constant 0 : i32
    return %c0_i32, %c0_i32_0 : i32, i32
  }
  func.func @transform_2(%arg0: i32) -> (i32, i32) {
    %c0_i32 = arith.constant 0 : i32
    %c0_i32_0 = arith.constant 0 : i32
    %c0_i32_1 = arith.constant 0 : i32
    return %c0_i32, %c0_i32_0 : i32, i32
  }
  func.func @transform_3(%arg0: i32) -> (i32, i32) {
    %c0_i32 = arith.constant 0 : i32
    %c0_i32_0 = arith.constant 0 : i32
    return %arg0, %c0_i32 : i32, i32
  }
}

</mosaic_0001>

<bundles_post_ra>
// kernel: tpu_custom_call.1
= control target key start
LH: loop header
LB: loop body
LE: loop exit
PB: predicated region body
PF: predicated region fallthrough
CT: control target
= control target key end

     0   :  { %8 = vsyncpa [#allocation3], 0  ;;  %s269_s0 = inlined_call_operand.hbm [shape: f32[16,128], index: 0, kind: input, shape index: {}]   ;;  %s270_s1 = inlined_call_operand.hbm [shape: f32[1,128], index: 1, kind: input, shape index: {}]   ;;  %s271_s2 = inlined_call_operand.vmem [shape: f32[1,128], index: 2, kind: input, shape index: {}]   ;;  %s272_s3 = inlined_call_operand.hbm [shape: bf16[16,128], index: 3, kind: output, shape index: {}]  }
   0x1   :  { %9 = vsyncpa [#allocation6], 0 }
   0x2   :  { %10 = vsyncpa [#allocation4], 0  ;;  %s15_s14 = sshll.u32 %s269_s0, 4  ;;  %s229_s15 = smov [#allocation2]   ;;  %s16_s14 = int_to_ptr.hbm [resolvable:$true] %s15_s14 }
   0x3   :  { %s17_s16 = sshll.u32 %s229_s15, 4  ;;  %s29_s19 = sshll.u32 %s270_s1, 4  ;;  %s18_s16 = int_to_ptr.vmem [resolvable:$true] %s17_s16  ;;  %s30_s19 = int_to_ptr.hbm [resolvable:$true] %s29_s19 }
   0x4   :  { %s230_s20 = smov 128   ;;  %s231_s21 = smov 8  }
   0x5   :  { %23 = dma.hbm_to_vmem [thread:$0]  %s16_s14, 256, %s18_s16, [#allocation3], %s230_s20, %s230_s20, %s231_s21  }
   0x6   :  { %s232_s22 = smov [#allocation5]  }
   0x7   :  { %s31_s23 = sshll.u32 %s232_s22, 4  ;;  %s32_s23 = int_to_ptr.vmem [resolvable:$true] %s31_s23 }
   0x8   :  { %34 = dma.hbm_to_vmem [thread:$0]  %s30_s19, 16, %s32_s23, [#allocation6]  }
   0x9   :  { %223 = dma.done.wait [#allocation3], 256  }
   0xa   :  { %224 = vsyncadd [#allocation3], 4294967040 }
   0xb   :  { %225 = dma.done.wait [#allocation6], 16  }
   0xc   :  { %226 = vsyncadd [#allocation6], 4294967280  ;;  %v45_v0 = vld [vmem:[#allocation2] sm:$0xff]  ;;  %v46_v1 = vld [vmem:[#allocation2 + $0x8] sm:$0xff]  ;;  %v233_v2 = vmov 128.0   ;;  %s234_s24 = smov [#allocation7]  }
   0xd   :  { %49 = vadd.xlane.f32.xlu0 %v45_v0  ;;  %145 = vrcp.f32 %v233_v2  ;;  %v143_v35 = vld [vmem:[#allocation5] ss:$0 sm:$0xff]  ;;  %v144_v41 = vld [vmem:[%s271_s2] ss:$0 sm:$0xff]  ;;  %s114_s25 = sshll.u32 %s234_s24, 4  ;;  %s116_s28 = sshll.u32 %s272_s3, 4  ;;  %s115_s25 = int_to_ptr.vmem [resolvable:$true] %s114_s25  ;;  %s117_s28 = int_to_ptr.hbm [resolvable:$true] %s116_s28 }
   0xe   :  { %s235_s29 = smov 64   ;;  %s236_s30 = smov 4  }
  0x13   :  { %v146_v3 = vpop.eup %145 }
  0x14   :  { %v54_v4 = vmul.f32 128.0, %v146_v3  ;;  %vm58_vm0 = vweird.f32 %v146_v3 }
  0x15   :  { %51 = vadd.xlane.f32.xlu0 %v46_v1 }
  0x16   :  { %v55_v5 = vsub.f32 1.0, %v54_v4 }
  0x18   :  { %v56_v6 = vmul.f32 %v146_v3, %v55_v5 }
  0x1a   :  { %v57_v7 = vadd.f32 %v146_v3, %v56_v6 }
  0x1c   :  { %v59_v8 = vsel %vm58_vm0, %v146_v3, %v57_v7 }
  0x80   :  { %v50_v9 = vpop.xlane.xlu0 %49 }
  0x81   :  { %v60_v10 = vmul.f32 %v59_v8, %v50_v9 }
  0x83   :  { %v62_v11 = vsub.f32 %v45_v0, %v60_v10 }
  0x85   :  { %v64_v12 = vmul.f32 %v62_v11, %v62_v11 }
  0x87   :  { %66 = vadd.xlane.f32.xlu1 %v64_v12 }
  0x88   :  { %v52_v13 = vpop.xlane.xlu0 %51 }
  0x89   :  { %v61_v14 = vmul.f32 %v59_v8, %v52_v13 }
  0x8b   :  { %v63_v15 = vsub.f32 %v46_v1, %v61_v14 }
  0x8d   :  { %v65_v16 = vmul.f32 %v63_v15, %v63_v15 }
  0x8f   :  { %68 = vadd.xlane.f32.xlu1 %v65_v16 }
  0xfa   :  { %v67_v17 = vpop.xlane.xlu1 %66 }
  0xfb   :  { %v70_v18 = vmul.f32 %v67_v17, %v59_v8 }
  0xfd   :  { %v72_v19 = vadd.f32 1e-05, %v70_v18 }
  0xff   :  { %147 = vrsqrt.f32 %v72_v19  ;;  %vm80_vm2 = vweird.f32 %v72_v19 }
 0x102   :  { %v69_v20 = vpop.xlane.xlu1 %68 }
 0x103   :  { %v71_v21 = vmul.f32 %v69_v20, %v59_v8 }
 0x105   :  { %v148_v22 = vpop.eup %147  ;;  %v73_v23 = vadd.f32 1e-05, %v71_v21 }
 0x106   :  { %v75_v24 = vmul.f32 %v148_v22, %v72_v19  ;;  %vm81_vm1 = vweird.f32 %v148_v22 }
 0x107   :  { %149 = vrsqrt.f32 %v73_v23  ;;  %vm82_vm3 = vmor %vm80_vm2, %vm81_vm1  ;;  %vm90_vm5 = vweird.f32 %v73_v23 }
 0x108   :  { %v76_v25 = vmul.f32 %v148_v22, %v75_v24 }
 0x10a   :  { %v77_v26 = vmul.f32 0.5, %v76_v25 }
 0x10c   :  { %v78_v27 = vsub.f32 1.5, %v77_v26 }
 0x10d   :  { %v150_v28 = vpop.eup %149 }
 0x10e   :  { %v79_v29 = vmul.f32 %v148_v22, %v78_v27  ;;  %v85_v30 = vmul.f32 %v150_v28, %v73_v23  ;;  %vm91_vm4 = vweird.f32 %v150_v28 }
 0x10f   :  { %vm92_vm6 = vmor %vm90_vm5, %vm91_vm4 }
 0x110   :  { %v86_v31 = vmul.f32 %v150_v28, %v85_v30  ;;  %v83_v32 = vsel %vm82_vm3, %v148_v22, %v79_v29 }
 0x111   :  { %v94_v36 = vmul.f32 %v83_v32, %v62_v11 }
 0x112   :  { %v87_v33 = vmul.f32 0.5, %v86_v31 }
 0x113   :  { %v99_v39 = vmul.f32 %v143_v35, %v94_v36 }
 0x114   :  { %v88_v34 = vsub.f32 1.5, %v87_v33 }
 0x115   :  { %v104_v43 = vadd.f32 %v144_v41, %v99_v39 }
 0x116   :  { %v89_v37 = vmul.f32 %v150_v28, %v88_v34 }
 0x118   :  { %v93_v38 = vsel %vm92_vm6, %v150_v28, %v89_v37 }
 0x119   :  { %v95_v40 = vmul.f32 %v93_v38, %v63_v15 }
 0x11b   :  { %v100_v42 = vmul.f32 %v143_v35, %v95_v40 }
 0x11d   :  { %v105_v44 = vadd.f32 %v144_v41, %v100_v42 }
 0x11f   :  { %v133_v45 = vpack.c.bf16 %v105_v44, %v104_v43 }
 0x121   :  { %134 = vst [vmem:[#allocation7] sm:$0xff] %v133_v45  }
 0x122   :  { %122 = dma.vmem_to_hbm [thread:$0]  %s115_s25, 128, %s117_s28, [#allocation4], %s235_s29, %s235_s29, %s236_s30  }
 0x123   :  { %227 = dma.done.wait [#allocation4], 128  }
 0x124   :  { %228 = vsyncadd [#allocation4], 4294967168 }
 0x125   :  { %127 = vsyncpa [#allocation3], 1 }
 0x126   :  { %128 = vsyncpa [#allocation6], 1 }
 0x127   :  { %129 = vsyncpa [#allocation4], 1 }

</bundles_post_ra>
